<compile_context>
chip_gen: v6e
topology: v6e:2x2x1
jax: 0.10.0
libtpu: 0.0.40
codegen_flags: <defaults>
</compile_context>

<pallas_src>
import functools

import jax
import jax.numpy as jnp
from jax.experimental import pallas as pl
from jax.experimental.pallas import tpu as pltpu

HIDDEN = 20          # nn.Linear(input_size, 20) -> Linear(20, 20) -> Linear(20, out)
LANE = 128           # TPU lane width; weight output dims padded to this inside the slab
SUB = 16             # bf16 sublane packing -> keep slab row offsets multiples of 16
TILE_B_MAX = 1024    # max batch tile (f32 x-block + f32 temporaries stay ~1.5 MiB)


def _round_up(n, m):
    return ((n + m - 1) // m) * m


def _slab_offsets(d):
    """Row offsets of (w1,b1,w2,b2,w3,b3) inside the packed bf16 parameter slab."""
    d_pad = _round_up(max(d, SUB), SUB)
    o_b1 = d_pad
    o_w2 = o_b1 + SUB
    o_b2 = o_w2 + LANE
    o_w3 = o_b2 + SUB
    o_b3 = o_w3 + LANE
    n_rows = o_b3 + SUB
    return o_b1, o_w2, o_b2, o_w3, o_b3, n_rows


def _make_kernel(d, out_size):
    """Fused 3-layer MLP kernel with static slab offsets baked in."""
    o_b1, o_w2, o_b2, o_w3, o_b3, n_rows = _slab_offsets(d)

    def mlp_kernel(x_ref, p_ref, o_ref):
        # x streamed in its native dtype; cast in-VMEM for the bf16 MXU path.
        x = x_ref[...].astype(jnp.bfloat16)                    # (tile_b, d)
        w1 = p_ref[0:d, :]                                     # (d, 128)  bf16
        b1 = p_ref[o_b1:o_b1 + 1, :].astype(jnp.float32)       # (1, 128)
        w2 = p_ref[o_w2:o_w2 + LANE, :]                        # (128, 128)
        b2 = p_ref[o_b2:o_b2 + 1, :].astype(jnp.float32)
        w3 = p_ref[o_w3:o_w3 + LANE, :]                        # (128, 128)
        b3 = p_ref[o_b3:o_b3 + 1, :].astype(jnp.float32)

        # bf16 matmuls, f32 accumulation + epilogue. Zero-padded lanes stay exactly
        # zero through bias+ReLU, so they never contaminate real outputs.
        h1 = jnp.dot(x, w1, preferred_element_type=jnp.float32) + b1
        h1 = jnp.maximum(h1, 0.0)
        h2 = jnp.dot(h1.astype(jnp.bfloat16), w2, preferred_element_type=jnp.float32) + b2
        h2 = jnp.maximum(h2, 0.0)
        out = jnp.dot(h2.astype(jnp.bfloat16), w3, preferred_element_type=jnp.float32) + b3
        # Narrow store: only the real out_size lanes ever touch HBM.
        o_ref[...] = out[:, :out_size].astype(o_ref.dtype)

    return mlp_kernel, n_rows


def pack_params(params):
    """Pack (w1,b1,w2,b2,w3,b3) into one lane-padded (rows, 128) bf16 slab."""
    w1, b1, w2, b2, w3, b3 = params
    d = w1.shape[0]
    out_size = w3.shape[1]
    o_b1, o_w2, o_b2, o_w3, o_b3, n_rows = _slab_offsets(d)

    bf = lambda a: a.astype(jnp.bfloat16)
    slab = jnp.zeros((n_rows, LANE), jnp.bfloat16)
    slab = slab.at[0:d, :HIDDEN].set(bf(w1))
    slab = slab.at[o_b1:o_b1 + 1, :HIDDEN].set(bf(b1))
    slab = slab.at[o_w2:o_w2 + HIDDEN, :HIDDEN].set(bf(w2))
    slab = slab.at[o_b2:o_b2 + 1, :HIDDEN].set(bf(b2))
    slab = slab.at[o_w3:o_w3 + HIDDEN, :out_size].set(bf(w3))
    slab = slab.at[o_b3:o_b3 + 1, :out_size].set(bf(b3))
    return slab, d, out_size


def _pick_tile_b(B):
    """Batch tile: multiple of 8; >=2 grid steps for medium/large B (v7x megacore)."""
    b8 = _round_up(B, 8)
    if b8 <= 256:                       # tiny batch: one tile, splitting is pure overhead
        return b8
    if b8 <= TILE_B_MAX:                # medium: split in two so both v7x TCs get work
        return _round_up((b8 + 1) // 2, 8)
    return TILE_B_MAX                   # large: grid already has >= 2 steps


@functools.partial(jax.jit, static_argnums=(2,))
def _forward_impl(x2d, slab, out_size):
    B, d = x2d.shape
    tile_b = _pick_tile_b(B)
    kernel, n_rows = _make_kernel(d, out_size)

    return pl.pallas_call(
        kernel,
        out_shape=jax.ShapeDtypeStruct((B, out_size), jnp.float32),
        grid=(pl.cdiv(B, tile_b),),
        in_specs=[
            # x: batch-tiled; last dim == full array dim, so no lane padding needed.
            pl.BlockSpec((tile_b, d), lambda i: (i, 0)),
            # parameter slab: constant block index -> VMEM-resident across grid steps.
            # TODO(synk): pipeline_mode=pl.Buffered(1) would drop its second buffer
            # (~90 KiB), but it is already negligible, so left at the default.
            pl.BlockSpec((n_rows, LANE), lambda i: (0, 0)),
        ],
        # Narrow (out_size-lane) output: avoids the extra XLA slice pass over a padded
        # 128-lane output. Boundary rows (B not a multiple of tile_b) are write-masked.
        out_specs=pl.BlockSpec((tile_b, out_size), lambda i: (i, 0)),
        compiler_params=pltpu.CompilerParams(
            dimension_semantics=("parallel",),        # shard batch tiles across TCs (v7x)
            vmem_limit_bytes=32 * 1024 * 1024,        # plenty of headroom (<3 MiB used)
        ),
    )(x2d, slab)


def neural_network_forward(x, packed):
    """Forward pass of NeuralNetwork: flatten + 3-layer MLP with ReLU."""
    slab, d, out_size = packed
    B = x.shape[0]
    x2d = x.reshape(B, -1)               # nn.Flatten()
    assert x2d.shape[1] == d
    return _forward_impl(x2d, slab, out_size)


def init_params(key, input_size, output_size):
    """Deterministic init mimicking PyTorch's default Linear init (uniform)."""
    def linear(key, fan_in, fan_out):
        kw, kb = jax.random.split(key)
        bound = 1.0 / jnp.sqrt(fan_in)
        # Stored as (in, out) so the kernel does x @ W  (== x @ W_pt.T in PyTorch).
        w = jax.random.uniform(kw, (fan_in, fan_out), jnp.float32, -bound, bound)
        b = jax.random.uniform(kb, (1, fan_out), jnp.float32, -bound, bound)
        return w, b

    k1, k2, k3 = jax.random.split(key, 3)
    w1, b1 = linear(k1, input_size, HIDDEN)
    w2, b2 = linear(k2, HIDDEN, HIDDEN)
    w3, b3 = linear(k3, HIDDEN, output_size)
    return (w1, b1, w2, b2, w3, b3)


def reference_forward(x, params):
    """Pure-JAX f32 reference for sanity checking."""
    w1, b1, w2, b2, w3, b3 = params
    x2d = x.reshape(x.shape[0], -1)
    h1 = jnp.maximum(x2d @ w1 + b1, 0.0)
    h2 = jnp.maximum(h1 @ w2 + b2, 0.0)
    return h2 @ w3 + b3


if __name__ == "__main__":
    key = jax.random.PRNGKey(0)
    kx, kp = jax.random.split(key)

    batch = 8
    input_size = 4 * 8       # x of shape (8, 4, 8) flattens to (8, 32)
    output_size = 10

    x = jax.random.normal(kx, (batch, 4, 8), dtype=jnp.float32)
    params = init_params(kp, input_size, output_size)
    packed = pack_params(params)     # pack + lane-pad weights once (bf16 slab)

    out = neural_network_forward(x, packed)
    out = jax.block_until_ready(out)

    ref = reference_forward(x, params)
    assert out.shape == (batch, output_size)
    # bf16 weights/activations (f32 accumulation) vs the f32 reference -> relaxed tolerance.
    assert jnp.allclose(out, ref, atol=3e-2, rtol=3e-2), float(jnp.max(jnp.abs(out - ref)))

    print("KERNEL_OK")
</pallas_src>

<mosaic_0001>
module attributes {stable_mosaic.version = 11 : i64} {
  func.func @mlp_kernel(%arg0: i32, %arg1: memref<8x32xf32, #tpu.memory_space<vmem>>, %arg2: memref<336x128xbf16, #tpu.memory_space<vmem>>, %arg3: memref<8x10xf32, #tpu.memory_space<vmem>>) attributes {dimension_semantics = [#tpu.dimension_semantics<parallel>], iteration_bounds = array<i64: 1>, scalar_prefetch = 0 : i64, scratch_operands = 0 : i64, tpu.core_type = #tpu.core_type<tc>, window_params = [{transform_indices = @transform_0, window_bounds = array<i64: 8, 32>}, {pipeline_mode = #tpu.pipeline_mode<synchronous>, transform_indices = @transform_1, window_bounds = array<i64: 336, 128>}, {transform_indices = @transform_2, window_bounds = array<i64: 8, 10>}]} {
    %c0 = arith.constant 0 : index
    %c0_0 = arith.constant 0 : index
    %0 = vector.load %arg1[%c0, %c0_0] : memref<8x32xf32, #tpu.memory_space<vmem>>, vector<8x32xf32>
    %1 = arith.truncf %0 : vector<8x32xf32> to vector<8x32xbf16>
    %c0_1 = arith.constant 0 : index
    %c0_2 = arith.constant 0 : index
    %2 = vector.load %arg2[%c0_1, %c0_2] : memref<336x128xbf16, #tpu.memory_space<vmem>>, vector<32x128xbf16>
    %c32 = arith.constant 32 : index
    %c0_3 = arith.constant 0 : index
    %3 = vector.load %arg2[%c32, %c0_3] : memref<336x128xbf16, #tpu.memory_space<vmem>>, vector<1x128xbf16>
    %4 = arith.extf %3 : vector<1x128xbf16> to vector<1x128xf32>
    %c48 = arith.constant 48 : index
    %c0_4 = arith.constant 0 : index
    %5 = vector.load %arg2[%c48, %c0_4] : memref<336x128xbf16, #tpu.memory_space<vmem>>, vector<128x128xbf16>
    %c176 = arith.constant 176 : index
    %c0_5 = arith.constant 0 : index
    %6 = vector.load %arg2[%c176, %c0_5] : memref<336x128xbf16, #tpu.memory_space<vmem>>, vector<1x128xbf16>
    %7 = arith.extf %6 : vector<1x128xbf16> to vector<1x128xf32>
    %c192 = arith.constant 192 : index
    %c0_6 = arith.constant 0 : index
    %8 = vector.load %arg2[%c192, %c0_6] : memref<336x128xbf16, #tpu.memory_space<vmem>>, vector<128x128xbf16>
    %c320 = arith.constant 320 : index
    %c0_7 = arith.constant 0 : index
    %9 = vector.load %arg2[%c320, %c0_7] : memref<336x128xbf16, #tpu.memory_space<vmem>>, vector<1x128xbf16>
    %10 = arith.extf %9 : vector<1x128xbf16> to vector<1x128xf32>
    %cst = arith.constant dense<0.000000e+00> : vector<8x128xf32>
    %11 = tpu.matmul %1, %2, %cst {dimension_numbers = #tpu.dot_dimension_numbers<[1], [0], [0], [1], [0, 0, 1, 1], [], []>} : vector<8x32xbf16>, vector<32x128xbf16>, vector<8x128xf32> -> vector<8x128xf32>
    %12 = vector.broadcast %4 : vector<1x128xf32> to vector<8x128xf32>
    %13 = arith.addf %11, %12 : vector<8x128xf32>
    %cst_8 = arith.constant 0.000000e+00 : f32
    %14 = vector.broadcast %cst_8 : f32 to vector<8x128xf32>
    %15 = arith.maximumf %13, %14 : vector<8x128xf32>
    %16 = arith.truncf %15 : vector<8x128xf32> to vector<8x128xbf16>
    %cst_9 = arith.constant dense<0.000000e+00> : vector<8x128xf32>
    %17 = tpu.matmul %16, %5, %cst_9 {dimension_numbers = #tpu.dot_dimension_numbers<[1], [0], [0], [1], [0, 0, 1, 1], [], []>} : vector<8x128xbf16>, vector<128x128xbf16>, vector<8x128xf32> -> vector<8x128xf32>
    %18 = vector.broadcast %7 : vector<1x128xf32> to vector<8x128xf32>
    %19 = arith.addf %17, %18 : vector<8x128xf32>
    %cst_10 = arith.constant 0.000000e+00 : f32
    %20 = vector.broadcast %cst_10 : f32 to vector<8x128xf32>
    %21 = arith.maximumf %19, %20 : vector<8x128xf32>
    %22 = arith.truncf %21 : vector<8x128xf32> to vector<8x128xbf16>
    %cst_11 = arith.constant dense<0.000000e+00> : vector<8x128xf32>
    %23 = tpu.matmul %22, %8, %cst_11 {dimension_numbers = #tpu.dot_dimension_numbers<[1], [0], [0], [1], [0, 0, 1, 1], [], []>} : vector<8x128xbf16>, vector<128x128xbf16>, vector<8x128xf32> -> vector<8x128xf32>
    %24 = vector.broadcast %10 : vector<1x128xf32> to vector<8x128xf32>
    %25 = arith.addf %23, %24 : vector<8x128xf32>
    %26 = vector.extract_strided_slice %25 {offsets = [0, 0], sizes = [8, 10], strides = [1, 1]} : vector<8x128xf32> to vector<8x10xf32>
    %c0_12 = arith.constant 0 : index
    %c0_13 = arith.constant 0 : index
    %27 = vector.load %arg3[%c0_12, %c0_13] : memref<8x10xf32, #tpu.memory_space<vmem>>, vector<8x10xf32>
    tpu.vector_store %arg3[%c0_12, %c0_13], %26 {strides = array<i32>} : memref<8x10xf32, #tpu.memory_space<vmem>>, vector<8x10xf32>,
    return
  }
  func.func @transform_0(%arg0: i32) -> (i32, i32) {
    %c0_i32 = arith.constant 0 : i32
    %c0_i32_0 = arith.constant 0 : i32
    return %arg0, %c0_i32 : i32, i32
  }
  func.func @transform_1(%arg0: i32) -> (i32, i32) {
    %c0_i32 = arith.constant 0 : i32
    %c0_i32_0 = arith.constant 0 : i32
    %c0_i32_1 = arith.constant 0 : i32
    return %c0_i32, %c0_i32_0 : i32, i32
  }
  func.func @transform_2(%arg0: i32) -> (i32, i32) {
    %c0_i32 = arith.constant 0 : i32
    %c0_i32_0 = arith.constant 0 : i32
    return %arg0, %c0_i32 : i32, i32
  }
}

</mosaic_0001>

<bundles_post_ra>
// kernel: _forward_impl.1
= control target key start
LH: loop header
LB: loop body
LE: loop exit
PB: predicated region body
PF: predicated region fallthrough
CT: control target
= control target key end

     0   :  { %7 = vsyncpa [#allocation3], 0  ;;  %s583_s0 = inlined_call_operand.hbm [shape: f32[8,32], index: 0, kind: input, shape index: {}]   ;;  %s584_s1 = inlined_call_operand.hbm [shape: bf16[336,128], index: 1, kind: input, shape index: {}]   ;;  %s585_s2 = inlined_call_operand.hbm [shape: f32[8,10], index: 2, kind: output, shape index: {}]  }
   0x1   :  { %8 = vsyncpa [#allocation6], 0 }
   0x2   :  { %9 = vsyncpa [#allocation4], 0  ;;  %s528_s9 = smov [#allocation2]   ;;  %s529_s11 = smov [#allocation5]  }
   0x3   :  { %s16_s10 = sshll.u32 %s528_s9, 4  ;;  %s25_s12 = sshll.u32 %s529_s11, 4  ;;  %s17_s10 = int_to_ptr.vmem [resolvable:$true] %s16_s10  ;;  %s26_s12 = int_to_ptr.vmem [resolvable:$true] %s25_s12 }
   0x4   :  { %s470_s13 = scalar_lea.vmem %s17_s10, 128  ;;  %p475_p1 = scmp.lt.s32.totalorder %s17_s10, %s17_s10 }
   0x5   :  { %p471_p0 = scmp.ne.s32.totalorder %s17_s10, %s470_s13  ;;  %p476_p2 = scmp.lt.s32.totalorder %s470_s13, %s470_s13 }
   0x7   :  { %p477_p3 = por %p476_p2, %p475_p1 }
   0x9   :  { %p478_p4 = pnand %p477_p3, %p471_p0 }
   0xb   :  { %481 = shalt.err (!%p478_p4)
}
   0xc   :  { %19 = dma.hbm_to_vmem [thread:$0]  %s583_s0, 128, %s17_s10, [#allocation3]  }
   0xd   :  { %s490_s16 = scalar_lea.vmem %s26_s12, 2688  ;;  %p495_p6 = scmp.lt.s32.totalorder %s26_s12, %s26_s12 }
   0xe   :  { %p491_p5 = scmp.ne.s32.totalorder %s26_s12, %s490_s16  ;;  %p496_p7 = scmp.lt.s32.totalorder %s490_s16, %s490_s16 }
  0x10   :  { %p497_p8 = por %p496_p7, %p495_p6 }
  0x12   :  { %p498_p9 = pnand %p497_p8, %p491_p5 }
  0x14   :  { %501 = shalt.err (!%p498_p9)
}
  0x15   :  { %s530_s17 = smov 64   ;;  %s531_s18 = smov 4  }
  0x16   :  { %31 = dma.hbm_to_vmem [thread:$0]  %s584_s1, 2688, %s26_s12, [#allocation6], %s530_s17, %s530_s17, %s531_s18  }
  0x17   :  { %522 = dma.done.wait [#allocation3], 128  }
  0x18   :  { %523 = vsyncadd [#allocation3], 4294967168 }
  0x19   :  { %524 = dma.done.wait [#allocation6], 2688  }
  0x1a   :  { %525 = vsyncadd [#allocation6], 4294964608  ;;  %v532_v0 = vmov 0.0   ;;  %vm533_vm0 = vmmov 0   ;;  %v444_v1 = vld [vmem:[#allocation5 + $0x8] sm:$0xff]   ;;  %v445_v2 = vld [vmem:[#allocation5] sm:$0xff]   ;;  %v83_v19 = vlaneseq }
  0x1b   :  { %389 = vmatprep.subr.bf16.mxu0 %v532_v0  ;;  %393 = vmatprep.mubr.msk.bf16.mxu0 %vm533_vm0, %v532_v0  ;;  %v39_v3 = vld [vmem:[#allocation2] sm:$0xff]  ;;  %v446_v4 = vld [vmem:[#allocation5 + $0x50] sm:$0xff]   ;;  %v447_v6 = vld [vmem:[#allocation5 + $0x48] sm:$0xff]   ;;  %vm99_vm1 = vcmask 261120   ;;  %s534_s0 = smov [#allocation7]   ;;  %vm331_vm2 = vcmask 80896  }
  0x1c   :  { %397 = vmatprep.subr.bf16.mxu1 %v532_v0  ;;  %413 = vmatprep.mubr.msk.bf16.mxu1 %vm533_vm0, %v532_v0  ;;  %v40_v5 = vpack.c.bf16 %v39_v3, %v39_v3  ;;  %v448_v7 = vld [vmem:[#allocation5 + $0x40] sm:$0xff]   ;;  %v449_v8 = vld [vmem:[#allocation5 + $0x38] sm:$0xff]   ;;  %v450_v9 = vld [vmem:[#allocation5 + $0x30] sm:$0xff]   ;;  %v84_v20 = vshrl.u32 %v83_v19, 7  ;;  %s339_s1 = sshll.u32 %s534_s0, 4  ;;  %s340_s1 = int_to_ptr.vmem [resolvable:$true] %s339_s1 }
  0x1d   :  { %390 = vmatpush3.bf16.msra.mxu0 %v444_v1  ;;  %398 = vmatpush3.bf16.msra.mxu1 %v446_v4  ;;  %v451_v10 = vld [vmem:[#allocation5 + $0x28] sm:$0xff]   ;;  %v452_v11 = vld [vmem:[#allocation5 + $0x20] sm:$0xff]   ;;  %v453_v12 = vld [vmem:[#allocation5 + $0x18] sm:$0xff]   ;;  %s502_s21 = scalar_lea.vmem %s340_s1, 128  ;;  %p507_p11 = scmp.lt.s32.totalorder %s340_s1, %s340_s1 }
  0x1e   :  { %391 = vmatprep.subr.bf16.mxu0 %v532_v0  ;;  %399 = vmatprep.subr.bf16.mxu1 %v532_v0  ;;  %v454_v13 = vld [vmem:[#allocation5 + $0x98] sm:$0xff]   ;;  %v455_v14 = vld [vmem:[#allocation5 + $0x90] sm:$0xff]   ;;  %v456_v15 = vld [vmem:[#allocation5 + $0x88] sm:$0xff]   ;;  %v85_v23 = vsub.s32 0, %v84_v20  ;;  %p503_p10 = scmp.ne.s32.totalorder %s340_s1, %s502_s21  ;;  %p508_p12 = scmp.lt.s32.totalorder %s502_s21, %s502_s21 }
  0x1f   :  { %v457_v16 = vld [vmem:[#allocation5 + $0x80] sm:$0xff]   ;;  %v458_v17 = vld [vmem:[#allocation5 + $0x78] sm:$0xff]   ;;  %v459_v18 = vld [vmem:[#allocation5 + $0x70] sm:$0xff]  }
  0x20   :  { %v45_v21 = vld [vmem:[#allocation5 + $0x10] sm:$0x1]  ;;  %v460_v32 = vld [vmem:[#allocation5 + $0x68] sm:$0xff]   ;;  %v461_v33 = vld [vmem:[#allocation5 + $0x60] sm:$0xff]   ;;  %p509_p13 = por %p508_p12, %p507_p11 }
  0x21   :  { %392 = vmatpush3.bf16.msra.mxu0 %v445_v2  ;;  %400 = vmatpush3.bf16.msra.mxu1 %v447_v6  ;;  %v46_v22 = vunpack.c.l.bf16 %v45_v21  ;;  %v63_v34 = vld [vmem:[#allocation5 + $0x58] sm:$0x1]  ;;  %v81_v44 = vld [vmem:[#allocation5 + $0xa0] sm:$0x1] }
  0x22   :  { %417 = vmatprep.subr.bf16.mxu0 %v532_v0  ;;  %401 = vmatprep.subr.bf16.mxu1 %v532_v0  ;;  %v64_v35 = vunpack.c.l.bf16 %v63_v34  ;;  %v82_v45 = vunpack.c.l.bf16 %v81_v44  ;;  %p510_p0 = pnand %p509_p13, %p503_p10 }
  0x23   :  { %v86_v24 = vrot.slane %v46_v22, %v85_v23 }
  0x24   :  { %394 = vmatmul.mubr.msk.bf16.vlgmr.msra.gmra.mxu0 %vm99_vm1, %v40_v5  ;;  %v148_v36 = vrot.slane %v64_v35, %v85_v23  ;;  %v242_v46 = vrot.slane %v82_v45, %v85_v23 }
  0x25   :  { %433 = vmatprep.mubr.msk.bf16.mxu0 %vm533_vm0, %v532_v0  ;;  %402 = vmatpush3.bf16.msra.mxu1 %v448_v7 }
  0x26   :  { %403 = vmatprep.subr.bf16.mxu1 %v532_v0  ;;  %418 = vmatpush3.bf16.msra.mxu0 %v454_v13 }
  0x27   :  { %419 = vmatprep.subr.bf16.mxu0 %v532_v0 }
  0x29   :  { %404 = vmatpush3.bf16.msra.mxu1 %v449_v8 }
  0x2a   :  { %405 = vmatprep.subr.bf16.mxu1 %v532_v0  ;;  %420 = vmatpush3.bf16.msra.mxu0 %v455_v14 }
  0x2b   :  { %421 = vmatprep.subr.bf16.mxu0 %v532_v0 }
  0x2d   :  { %406 = vmatpush3.bf16.msra.mxu1 %v450_v9 }
  0x2e   :  { %407 = vmatprep.subr.bf16.mxu1 %v532_v0  ;;  %422 = vmatpush3.bf16.msra.mxu0 %v456_v15 }
  0x2f   :  { %423 = vmatprep.subr.bf16.mxu0 %v532_v0 }
  0x31   :  { %408 = vmatpush3.bf16.msra.mxu1 %v451_v10 }
  0x32   :  { %409 = vmatprep.subr.bf16.mxu1 %v532_v0  ;;  %424 = vmatpush3.bf16.msra.mxu0 %v457_v16 }
  0x33   :  { %425 = vmatprep.subr.bf16.mxu0 %v532_v0 }
  0x35   :  { %410 = vmatpush3.bf16.msra.mxu1 %v452_v11 }
  0x36   :  { %411 = vmatprep.subr.bf16.mxu1 %v532_v0  ;;  %426 = vmatpush3.bf16.msra.mxu0 %v458_v17 }
  0x37   :  { %427 = vmatprep.subr.bf16.mxu0 %v532_v0 }
  0x39   :  { %412 = vmatpush3.bf16.msra.mxu1 %v453_v12 }
  0x3a   :  { %428 = vmatpush3.bf16.msra.mxu0 %v459_v18 }
  0x3b   :  { %429 = vmatprep.subr.bf16.mxu0 %v532_v0 }
  0x3e   :  { %430 = vmatpush3.bf16.msra.mxu0 %v460_v32 }
  0x3f   :  { %431 = vmatprep.subr.bf16.mxu0 %v532_v0 }
  0x42   :  { %432 = vmatpush3.bf16.msra.mxu0 %v461_v33 }
  0xe4   :  { %v137_v25 = vpop.f32.mrf.mxu0 }
  0xe5   :  { %v138_v26 = vadd.f32 %v137_v25, %v86_v24 }
  0xe6   :  { %v395_v27 = vpop.f32.mrf.mxu0 }
  0xe7   :  { %v143_v28 = vmax.f32 %v138_v26, 0.0 }
  0xe8   :  { %v140_v29 = vpop.f32.mrf.mxu0 }
  0xe9   :  { %v144_v30 = vpack.c.bf16 %v143_v28, %v143_v28 }
  0xea   :  { %v396_v31 = vpop.f32.mrf.mxu0 }
  0xeb   :  { %414 = vmatmul.mubr.bf16.vlgmr.msra.gmra.mxu1 %v144_v30 }
 0x1ab   :  { %v231_v37 = vpop.f32.mrf.mxu1 }
 0x1ac   :  { %v232_v38 = vadd.f32 %v231_v37, %v148_v36 }
 0x1ad   :  { %v415_v39 = vpop.f32.mrf.mxu1 }
 0x1ae   :  { %v237_v40 = vmax.f32 %v232_v38, 0.0 }
 0x1af   :  { %v234_v41 = vpop.f32.mrf.mxu1 }
 0x1b0   :  { %v238_v42 = vpack.c.bf16 %v237_v40, %v237_v40 }
 0x1b1   :  { %v416_v43 = vpop.f32.mrf.mxu1 }
 0x1b2   :  { %434 = vmatmul.mubr.bf16.vlgmr.msra.gmra.mxu0 %v238_v42 }
 0x272   :  { %v325_v47 = vpop.f32.mrf.mxu0 }
 0x273   :  { %v326_v48 = vadd.f32 %v325_v47, %v242_v46 }
 0x274   :  { %v435_v49 = vpop.f32.mrf.mxu0 }
 0x275   :  { %332 = vst.msk [vmem:[#allocation7] sm:$0xff] %vm331_vm2, %v326_v48 }
 0x276   :  { %v328_v50 = vpop.f32.mrf.mxu0 }
 0x277   :  { %513 = shalt.err (!%p510_p0)
}
 0x278   :  { %342 = dma.vmem_to_hbm [thread:$0]  %s340_s1, 128, %s585_s2, [#allocation4]   ;;  %v436_v51 = vpop.f32.mrf.mxu0 }
 0x279   :  { %526 = dma.done.wait [#allocation4], 128  }
 0x27a   :  { %527 = vsyncadd [#allocation4], 4294967168 }
 0x27b   :  { %346 = vsyncpa [#allocation3], 1 }
 0x27c   :  { %347 = vsyncpa [#allocation6], 1 }
 0x27d   :  { %348 = vsyncpa [#allocation4], 1 }

</bundles_post_ra>
